<compile_context>
chip_gen: v6e
topology: v6e:2x2x1
jax: 0.10.0
libtpu: 0.0.40
codegen_flags: <defaults>
</compile_context>

<pallas_src>
import jax
import jax.numpy as jnp
from jax.experimental import pallas as pl
from jax.experimental.pallas import tpu as pltpu

IN_DIM = 5
HID_DIM = 10
OUT_DIM = 1


def mlp_kernel(w1_ref, b1_ref, w2_ref, b2_ref, x_ref, o_ref):
    """Lane-packed MLP tile.

    x_ref : (IN_DIM, TB)  f32 VMEM  -- one batch tile, batch on the lane axis
    o_ref : (OUT_DIM, TB) f32 VMEM  -- lane-dense output (unmasked full-width stores)
    w1_ref: (IN_DIM*HID_DIM,) f32 SMEM  (row-major: (k, j) -> k*HID_DIM + j)
    b1_ref: (HID_DIM,) f32 SMEM
    w2_ref: (HID_DIM,) f32 SMEM
    b2_ref: (OUT_DIM,) f32 SMEM
    """
    tb = x_ref.shape[1]
    # Load the 5 input-feature rows once; each is a (1, TB) lane-dense slab.
    xs = [x_ref[k:k + 1, :] for k in range(IN_DIM)]

    y = jnp.zeros((1, tb), jnp.float32) + b2_ref[0]
    # Fully unrolled VPU broadcast-FMAs (50 + 10 FMAs per batch tile) -- no MXU.
    for j in range(HID_DIM):
        h = jnp.zeros((1, tb), jnp.float32) + b1_ref[j]
        for k in range(IN_DIM):
            h = h + w1_ref[k * HID_DIM + j] * xs[k]
        h = jnp.maximum(h, 0.0)            # ReLU
        y = y + w2_ref[j] * h
    # Sigmoid = 1 / (1 + exp(-y)); exp and approx reciprocal both go to the EUP slot.
    o_ref[...] = pl.reciprocal(1.0 + jnp.exp(-y), approx=True).astype(o_ref.dtype)


def _round_up(n, m):
    return ((n + m - 1) // m) * m


def mlp_forward(x, w1, b1, w2, b2, *, tb=2048):
    """x: (B, IN_DIM) f32. Returns (B, OUT_DIM) f32 = sigmoid(relu(x@w1+b1)@w2+b2)."""
    B = x.shape[0]
    # Lane-dense tiles must be multiples of 128; shrink the tile for small batches.
    tb = min(tb, _round_up(max(B, 1), 128))
    bp = _round_up(max(B, 1), tb)

    # Batch on the lane axis: (IN_DIM, Bp). Zero-padded columns are sliced off below.
    x_t = jnp.pad(x.astype(jnp.float32), ((0, bp - B), (0, 0))).T

    # Flatten the 66 weight/bias scalars for SMEM residency.
    w1_s = jnp.reshape(w1, (IN_DIM * HID_DIM,)).astype(jnp.float32)
    b1_s = jnp.reshape(b1, (HID_DIM,)).astype(jnp.float32)
    w2_s = jnp.reshape(w2, (HID_DIM,)).astype(jnp.float32)
    b2_s = jnp.reshape(b2, (OUT_DIM,)).astype(jnp.float32)

    out_t = pl.pallas_call(
        mlp_kernel,
        out_shape=jax.ShapeDtypeStruct((OUT_DIM, bp), jnp.float32),
        grid=(bp // tb,),
        in_specs=[
            pl.BlockSpec(memory_space=pltpu.SMEM),            # w1 (scalars)
            pl.BlockSpec(memory_space=pltpu.SMEM),            # b1
            pl.BlockSpec(memory_space=pltpu.SMEM),            # w2
            pl.BlockSpec(memory_space=pltpu.SMEM),            # b2
            pl.BlockSpec((IN_DIM, tb), lambda i: (0, i)),     # x tile (VMEM, pipelined)
        ],
        out_specs=pl.BlockSpec((OUT_DIM, tb), lambda i: (0, i)),
        compiler_params=pltpu.CompilerParams(
            dimension_semantics=("parallel",),                # shard batch axis across TCs (v7x)
        ),
    )(w1_s, b1_s, w2_s, b2_s, x_t)

    return out_t[:, :B].T


def init_params(key):
    # Deterministic init mimicking torch.nn.Linear default: U(-1/sqrt(fan_in), +1/sqrt(fan_in))
    k1, k2, k3, k4 = jax.random.split(key, 4)
    bound1 = 1.0 / jnp.sqrt(IN_DIM)
    bound2 = 1.0 / jnp.sqrt(HID_DIM)
    w1 = jax.random.uniform(k1, (IN_DIM, HID_DIM), jnp.float32, -bound1, bound1)
    b1 = jax.random.uniform(k2, (1, HID_DIM), jnp.float32, -bound1, bound1)
    w2 = jax.random.uniform(k3, (HID_DIM, OUT_DIM), jnp.float32, -bound2, bound2)
    b2 = jax.random.uniform(k4, (1, OUT_DIM), jnp.float32, -bound2, bound2)
    return w1, b1, w2, b2


if __name__ == "__main__":
    key = jax.random.PRNGKey(0)
    kx, kp = jax.random.split(key)
    B = 8
    x = jax.random.normal(kx, (B, IN_DIM), jnp.float32)
    w1, b1, w2, b2 = init_params(kp)

    out = jax.block_until_ready(mlp_forward(x, w1, b1, w2, b2))

    # Pure-JAX reference check (tolerance accounts for the EUP approx reciprocal in sigmoid).
    ref = jax.nn.sigmoid(jnp.maximum(x @ w1 + b1, 0.0) @ w2 + b2)
    assert out.shape == (B, OUT_DIM)
    assert jnp.allclose(out, ref, atol=2e-3, rtol=2e-3), float(jnp.max(jnp.abs(out - ref)))

    # TODO(synk): for tiny standalone batches (B~8) a fused XLA dot+elementwise beats any
    # pallas_call launch overhead; this kernel targets large-B inference.
    print("KERNEL_OK")
</pallas_src>

<mosaic_0001>
module attributes {stable_mosaic.version = 11 : i64} {
  func.func @mlp_kernel(%arg0: i32, %arg1: memref<50xf32, #tpu.memory_space<smem>>, %arg2: memref<10xf32, #tpu.memory_space<smem>>, %arg3: memref<10xf32, #tpu.memory_space<smem>>, %arg4: memref<1xf32, #tpu.memory_space<smem>>, %arg5: memref<5x128xf32, #tpu.memory_space<vmem>>, %arg6: memref<1x128xf32, #tpu.memory_space<vmem>>) attributes {dimension_semantics = [#tpu.dimension_semantics<parallel>], iteration_bounds = array<i64: 1>, scalar_prefetch = 0 : i64, scratch_operands = 0 : i64, tpu.core_type = #tpu.core_type<tc>, window_params = [{transform_indices = @transform_0, window_bounds = array<i64: 50>}, {transform_indices = @transform_1, window_bounds = array<i64: 10>}, {transform_indices = @transform_2, window_bounds = array<i64: 10>}, {transform_indices = @transform_3, window_bounds = array<i64: 1>}, {transform_indices = @transform_4, window_bounds = array<i64: 5, 128>}, {transform_indices = @transform_5, window_bounds = array<i64: 1, 128>}]} {
    %c0 = arith.constant 0 : index
    %c0_0 = arith.constant 0 : index
    %0 = vector.load %arg5[%c0, %c0_0] : memref<5x128xf32, #tpu.memory_space<vmem>>, vector<1x128xf32>
    %c1 = arith.constant 1 : index
    %c0_1 = arith.constant 0 : index
    %1 = vector.load %arg5[%c1, %c0_1] : memref<5x128xf32, #tpu.memory_space<vmem>>, vector<1x128xf32>
    %c2 = arith.constant 2 : index
    %c0_2 = arith.constant 0 : index
    %2 = vector.load %arg5[%c2, %c0_2] : memref<5x128xf32, #tpu.memory_space<vmem>>, vector<1x128xf32>
    %c3 = arith.constant 3 : index
    %c0_3 = arith.constant 0 : index
    %3 = vector.load %arg5[%c3, %c0_3] : memref<5x128xf32, #tpu.memory_space<vmem>>, vector<1x128xf32>
    %c4 = arith.constant 4 : index
    %c0_4 = arith.constant 0 : index
    %4 = vector.load %arg5[%c4, %c0_4] : memref<5x128xf32, #tpu.memory_space<vmem>>, vector<1x128xf32>
    %cst = arith.constant 0.000000e+00 : f32
    %5 = vector.broadcast %cst : f32 to vector<1x128xf32>
    %c0_5 = arith.constant 0 : index
    %6 = memref.load %arg4[%c0_5] : memref<1xf32, #tpu.memory_space<smem>>
    %7 = vector.broadcast %6 : f32 to vector<1x128xf32>
    %8 = arith.addf %5, %7 : vector<1x128xf32>
    %cst_6 = arith.constant 0.000000e+00 : f32
    %9 = vector.broadcast %cst_6 : f32 to vector<1x128xf32>
    %c0_7 = arith.constant 0 : index
    %10 = memref.load %arg2[%c0_7] : memref<10xf32, #tpu.memory_space<smem>>
    %11 = vector.broadcast %10 : f32 to vector<1x128xf32>
    %12 = arith.addf %9, %11 : vector<1x128xf32>
    %c0_8 = arith.constant 0 : index
    %13 = memref.load %arg1[%c0_8] : memref<50xf32, #tpu.memory_space<smem>>
    %14 = vector.broadcast %13 : f32 to vector<1x128xf32>
    %15 = arith.mulf %14, %0 : vector<1x128xf32>
    %16 = arith.addf %12, %15 : vector<1x128xf32>
    %c10 = arith.constant 10 : index
    %17 = memref.load %arg1[%c10] : memref<50xf32, #tpu.memory_space<smem>>
    %18 = vector.broadcast %17 : f32 to vector<1x128xf32>
    %19 = arith.mulf %18, %1 : vector<1x128xf32>
    %20 = arith.addf %16, %19 : vector<1x128xf32>
    %c20 = arith.constant 20 : index
    %21 = memref.load %arg1[%c20] : memref<50xf32, #tpu.memory_space<smem>>
    %22 = vector.broadcast %21 : f32 to vector<1x128xf32>
    %23 = arith.mulf %22, %2 : vector<1x128xf32>
    %24 = arith.addf %20, %23 : vector<1x128xf32>
    %c30 = arith.constant 30 : index
    %25 = memref.load %arg1[%c30] : memref<50xf32, #tpu.memory_space<smem>>
    %26 = vector.broadcast %25 : f32 to vector<1x128xf32>
    %27 = arith.mulf %26, %3 : vector<1x128xf32>
    %28 = arith.addf %24, %27 : vector<1x128xf32>
    %c40 = arith.constant 40 : index
    %29 = memref.load %arg1[%c40] : memref<50xf32, #tpu.memory_space<smem>>
    %30 = vector.broadcast %29 : f32 to vector<1x128xf32>
    %31 = arith.mulf %30, %4 : vector<1x128xf32>
    %32 = arith.addf %28, %31 : vector<1x128xf32>
    %cst_9 = arith.constant 0.000000e+00 : f32
    %33 = vector.broadcast %cst_9 : f32 to vector<1x128xf32>
    %34 = arith.maximumf %32, %33 : vector<1x128xf32>
    %c0_10 = arith.constant 0 : index
    %35 = memref.load %arg3[%c0_10] : memref<10xf32, #tpu.memory_space<smem>>
    %36 = vector.broadcast %35 : f32 to vector<1x128xf32>
    %37 = arith.mulf %36, %34 : vector<1x128xf32>
    %38 = arith.addf %8, %37 : vector<1x128xf32>
    %cst_11 = arith.constant 0.000000e+00 : f32
    %39 = vector.broadcast %cst_11 : f32 to vector<1x128xf32>
    %c1_12 = arith.constant 1 : index
    %40 = memref.load %arg2[%c1_12] : memref<10xf32, #tpu.memory_space<smem>>
    %41 = vector.broadcast %40 : f32 to vector<1x128xf32>
    %42 = arith.addf %39, %41 : vector<1x128xf32>
    %c1_13 = arith.constant 1 : index
    %43 = memref.load %arg1[%c1_13] : memref<50xf32, #tpu.memory_space<smem>>
    %44 = vector.broadcast %43 : f32 to vector<1x128xf32>
    %45 = arith.mulf %44, %0 : vector<1x128xf32>
    %46 = arith.addf %42, %45 : vector<1x128xf32>
    %c11 = arith.constant 11 : index
    %47 = memref.load %arg1[%c11] : memref<50xf32, #tpu.memory_space<smem>>
    %48 = vector.broadcast %47 : f32 to vector<1x128xf32>
    %49 = arith.mulf %48, %1 : vector<1x128xf32>
    %50 = arith.addf %46, %49 : vector<1x128xf32>
    %c21 = arith.constant 21 : index
    %51 = memref.load %arg1[%c21] : memref<50xf32, #tpu.memory_space<smem>>
    %52 = vector.broadcast %51 : f32 to vector<1x128xf32>
    %53 = arith.mulf %52, %2 : vector<1x128xf32>
    %54 = arith.addf %50, %53 : vector<1x128xf32>
    %c31 = arith.constant 31 : index
    %55 = memref.load %arg1[%c31] : memref<50xf32, #tpu.memory_space<smem>>
    %56 = vector.broadcast %55 : f32 to vector<1x128xf32>
    %57 = arith.mulf %56, %3 : vector<1x128xf32>
    %58 = arith.addf %54, %57 : vector<1x128xf32>
    %c41 = arith.constant 41 : index
    %59 = memref.load %arg1[%c41] : memref<50xf32, #tpu.memory_space<smem>>
    %60 = vector.broadcast %59 : f32 to vector<1x128xf32>
    %61 = arith.mulf %60, %4 : vector<1x128xf32>
    %62 = arith.addf %58, %61 : vector<1x128xf32>
    %cst_14 = arith.constant 0.000000e+00 : f32
    %63 = vector.broadcast %cst_14 : f32 to vector<1x128xf32>
    %64 = arith.maximumf %62, %63 : vector<1x128xf32>
    %c1_15 = arith.constant 1 : index
    %65 = memref.load %arg3[%c1_15] : memref<10xf32, #tpu.memory_space<smem>>
    %66 = vector.broadcast %65 : f32 to vector<1x128xf32>
    %67 = arith.mulf %66, %64 : vector<1x128xf32>
    %68 = arith.addf %38, %67 : vector<1x128xf32>
    %cst_16 = arith.constant 0.000000e+00 : f32
    %69 = vector.broadcast %cst_16 : f32 to vector<1x128xf32>
    %c2_17 = arith.constant 2 : index
    %70 = memref.load %arg2[%c2_17] : memref<10xf32, #tpu.memory_space<smem>>
    %71 = vector.broadcast %70 : f32 to vector<1x128xf32>
    %72 = arith.addf %69, %71 : vector<1x128xf32>
    %c2_18 = arith.constant 2 : index
    %73 = memref.load %arg1[%c2_18] : memref<50xf32, #tpu.memory_space<smem>>
    %74 = vector.broadcast %73 : f32 to vector<1x128xf32>
    %75 = arith.mulf %74, %0 : vector<1x128xf32>
    %76 = arith.addf %72, %75 : vector<1x128xf32>
    %c12 = arith.constant 12 : index
    %77 = memref.load %arg1[%c12] : memref<50xf32, #tpu.memory_space<smem>>
    %78 = vector.broadcast %77 : f32 to vector<1x128xf32>
    %79 = arith.mulf %78, %1 : vector<1x128xf32>
    %80 = arith.addf %76, %79 : vector<1x128xf32>
    %c22 = arith.constant 22 : index
    %81 = memref.load %arg1[%c22] : memref<50xf32, #tpu.memory_space<smem>>
    %82 = vector.broadcast %81 : f32 to vector<1x128xf32>
    %83 = arith.mulf %82, %2 : vector<1x128xf32>
    %84 = arith.addf %80, %83 : vector<1x128xf32>
    %c32 = arith.constant 32 : index
    %85 = memref.load %arg1[%c32] : memref<50xf32, #tpu.memory_space<smem>>
    %86 = vector.broadcast %85 : f32 to vector<1x128xf32>
    %87 = arith.mulf %86, %3 : vector<1x128xf32>
    %88 = arith.addf %84, %87 : vector<1x128xf32>
    %c42 = arith.constant 42 : index
    %89 = memref.load %arg1[%c42] : memref<50xf32, #tpu.memory_space<smem>>
    %90 = vector.broadcast %89 : f32 to vector<1x128xf32>
    %91 = arith.mulf %90, %4 : vector<1x128xf32>
    %92 = arith.addf %88, %91 : vector<1x128xf32>
    %cst_19 = arith.constant 0.000000e+00 : f32
    %93 = vector.broadcast %cst_19 : f32 to vector<1x128xf32>
    %94 = arith.maximumf %92, %93 : vector<1x128xf32>
    %c2_20 = arith.constant 2 : index
    %95 = memref.load %arg3[%c2_20] : memref<10xf32, #tpu.memory_space<smem>>
    %96 = vector.broadcast %95 : f32 to vector<1x128xf32>
    %97 = arith.mulf %96, %94 : vector<1x128xf32>
    %98 = arith.addf %68, %97 : vector<1x128xf32>
    %cst_21 = arith.constant 0.000000e+00 : f32
    %99 = vector.broadcast %cst_21 : f32 to vector<1x128xf32>
    %c3_22 = arith.constant 3 : index
    %100 = memref.load %arg2[%c3_22] : memref<10xf32, #tpu.memory_space<smem>>
    %101 = vector.broadcast %100 : f32 to vector<1x128xf32>
    %102 = arith.addf %99, %101 : vector<1x128xf32>
    %c3_23 = arith.constant 3 : index
    %103 = memref.load %arg1[%c3_23] : memref<50xf32, #tpu.memory_space<smem>>
    %104 = vector.broadcast %103 : f32 to vector<1x128xf32>
    %105 = arith.mulf %104, %0 : vector<1x128xf32>
    %106 = arith.addf %102, %105 : vector<1x128xf32>
    %c13 = arith.constant 13 : index
    %107 = memref.load %arg1[%c13] : memref<50xf32, #tpu.memory_space<smem>>
    %108 = vector.broadcast %107 : f32 to vector<1x128xf32>
    %109 = arith.mulf %108, %1 : vector<1x128xf32>
    %110 = arith.addf %106, %109 : vector<1x128xf32>
    %c23 = arith.constant 23 : index
    %111 = memref.load %arg1[%c23] : memref<50xf32, #tpu.memory_space<smem>>
    %112 = vector.broadcast %111 : f32 to vector<1x128xf32>
    %113 = arith.mulf %112, %2 : vector<1x128xf32>
    %114 = arith.addf %110, %113 : vector<1x128xf32>
    %c33 = arith.constant 33 : index
    %115 = memref.load %arg1[%c33] : memref<50xf32, #tpu.memory_space<smem>>
    %116 = vector.broadcast %115 : f32 to vector<1x128xf32>
    %117 = arith.mulf %116, %3 : vector<1x128xf32>
    %118 = arith.addf %114, %117 : vector<1x128xf32>
    %c43 = arith.constant 43 : index
    %119 = memref.load %arg1[%c43] : memref<50xf32, #tpu.memory_space<smem>>
    %120 = vector.broadcast %119 : f32 to vector<1x128xf32>
    %121 = arith.mulf %120, %4 : vector<1x128xf32>
    %122 = arith.addf %118, %121 : vector<1x128xf32>
    %cst_24 = arith.constant 0.000000e+00 : f32
    %123 = vector.broadcast %cst_24 : f32 to vector<1x128xf32>
    %124 = arith.maximumf %122, %123 : vector<1x128xf32>
    %c3_25 = arith.constant 3 : index
    %125 = memref.load %arg3[%c3_25] : memref<10xf32, #tpu.memory_space<smem>>
    %126 = vector.broadcast %125 : f32 to vector<1x128xf32>
    %127 = arith.mulf %126, %124 : vector<1x128xf32>
    %128 = arith.addf %98, %127 : vector<1x128xf32>
    %cst_26 = arith.constant 0.000000e+00 : f32
    %129 = vector.broadcast %cst_26 : f32 to vector<1x128xf32>
    %c4_27 = arith.constant 4 : index
    %130 = memref.load %arg2[%c4_27] : memref<10xf32, #tpu.memory_space<smem>>
    %131 = vector.broadcast %130 : f32 to vector<1x128xf32>
    %132 = arith.addf %129, %131 : vector<1x128xf32>
    %c4_28 = arith.constant 4 : index
    %133 = memref.load %arg1[%c4_28] : memref<50xf32, #tpu.memory_space<smem>>
    %134 = vector.broadcast %133 : f32 to vector<1x128xf32>
    %135 = arith.mulf %134, %0 : vector<1x128xf32>
    %136 = arith.addf %132, %135 : vector<1x128xf32>
    %c14 = arith.constant 14 : index
    %137 = memref.load %arg1[%c14] : memref<50xf32, #tpu.memory_space<smem>>
    %138 = vector.broadcast %137 : f32 to vector<1x128xf32>
    %139 = arith.mulf %138, %1 : vector<1x128xf32>
    %140 = arith.addf %136, %139 : vector<1x128xf32>
    %c24 = arith.constant 24 : index
    %141 = memref.load %arg1[%c24] : memref<50xf32, #tpu.memory_space<smem>>
    %142 = vector.broadcast %141 : f32 to vector<1x128xf32>
    %143 = arith.mulf %142, %2 : vector<1x128xf32>
    %144 = arith.addf %140, %143 : vector<1x128xf32>
    %c34 = arith.constant 34 : index
    %145 = memref.load %arg1[%c34] : memref<50xf32, #tpu.memory_space<smem>>
    %146 = vector.broadcast %145 : f32 to vector<1x128xf32>
    %147 = arith.mulf %146, %3 : vector<1x128xf32>
    %148 = arith.addf %144, %147 : vector<1x128xf32>
    %c44 = arith.constant 44 : index
    %149 = memref.load %arg1[%c44] : memref<50xf32, #tpu.memory_space<smem>>
    %150 = vector.broadcast %149 : f32 to vector<1x128xf32>
    %151 = arith.mulf %150, %4 : vector<1x128xf32>
    %152 = arith.addf %148, %151 : vector<1x128xf32>
    %cst_29 = arith.constant 0.000000e+00 : f32
    %153 = vector.broadcast %cst_29 : f32 to vector<1x128xf32>
    %154 = arith.maximumf %152, %153 : vector<1x128xf32>
    %c4_30 = arith.constant 4 : index
    %155 = memref.load %arg3[%c4_30] : memref<10xf32, #tpu.memory_space<smem>>
    %156 = vector.broadcast %155 : f32 to vector<1x128xf32>
    %157 = arith.mulf %156, %154 : vector<1x128xf32>
    %158 = arith.addf %128, %157 : vector<1x128xf32>
    %cst_31 = arith.constant 0.000000e+00 : f32
    %159 = vector.broadcast %cst_31 : f32 to vector<1x128xf32>
    %c5 = arith.constant 5 : index
    %160 = memref.load %arg2[%c5] : memref<10xf32, #tpu.memory_space<smem>>
    %161 = vector.broadcast %160 : f32 to vector<1x128xf32>
    %162 = arith.addf %159, %161 : vector<1x128xf32>
    %c5_32 = arith.constant 5 : index
    %163 = memref.load %arg1[%c5_32] : memref<50xf32, #tpu.memory_space<smem>>
    %164 = vector.broadcast %163 : f32 to vector<1x128xf32>
    %165 = arith.mulf %164, %0 : vector<1x128xf32>
    %166 = arith.addf %162, %165 : vector<1x128xf32>
    %c15 = arith.constant 15 : index
    %167 = memref.load %arg1[%c15] : memref<50xf32, #tpu.memory_space<smem>>
    %168 = vector.broadcast %167 : f32 to vector<1x128xf32>
    %169 = arith.mulf %168, %1 : vector<1x128xf32>
    %170 = arith.addf %166, %169 : vector<1x128xf32>
    %c25 = arith.constant 25 : index
    %171 = memref.load %arg1[%c25] : memref<50xf32, #tpu.memory_space<smem>>
    %172 = vector.broadcast %171 : f32 to vector<1x128xf32>
    %173 = arith.mulf %172, %2 : vector<1x128xf32>
    %174 = arith.addf %170, %173 : vector<1x128xf32>
    %c35 = arith.constant 35 : index
    %175 = memref.load %arg1[%c35] : memref<50xf32, #tpu.memory_space<smem>>
    %176 = vector.broadcast %175 : f32 to vector<1x128xf32>
    %177 = arith.mulf %176, %3 : vector<1x128xf32>
    %178 = arith.addf %174, %177 : vector<1x128xf32>
    %c45 = arith.constant 45 : index
    %179 = memref.load %arg1[%c45] : memref<50xf32, #tpu.memory_space<smem>>
    %180 = vector.broadcast %179 : f32 to vector<1x128xf32>
    %181 = arith.mulf %180, %4 : vector<1x128xf32>
    %182 = arith.addf %178, %181 : vector<1x128xf32>
    %cst_33 = arith.constant 0.000000e+00 : f32
    %183 = vector.broadcast %cst_33 : f32 to vector<1x128xf32>
    %184 = arith.maximumf %182, %183 : vector<1x128xf32>
    %c5_34 = arith.constant 5 : index
    %185 = memref.load %arg3[%c5_34] : memref<10xf32, #tpu.memory_space<smem>>
    %186 = vector.broadcast %185 : f32 to vector<1x128xf32>
    %187 = arith.mulf %186, %184 : vector<1x128xf32>
    %188 = arith.addf %158, %187 : vector<1x128xf32>
    %cst_35 = arith.constant 0.000000e+00 : f32
    %189 = vector.broadcast %cst_35 : f32 to vector<1x128xf32>
    %c6 = arith.constant 6 : index
    %190 = memref.load %arg2[%c6] : memref<10xf32, #tpu.memory_space<smem>>
    %191 = vector.broadcast %190 : f32 to vector<1x128xf32>
    %192 = arith.addf %189, %191 : vector<1x128xf32>
    %c6_36 = arith.constant 6 : index
    %193 = memref.load %arg1[%c6_36] : memref<50xf32, #tpu.memory_space<smem>>
    %194 = vector.broadcast %193 : f32 to vector<1x128xf32>
    %195 = arith.mulf %194, %0 : vector<1x128xf32>
    %196 = arith.addf %192, %195 : vector<1x128xf32>
    %c16 = arith.constant 16 : index
    %197 = memref.load %arg1[%c16] : memref<50xf32, #tpu.memory_space<smem>>
    %198 = vector.broadcast %197 : f32 to vector<1x128xf32>
    %199 = arith.mulf %198, %1 : vector<1x128xf32>
    %200 = arith.addf %196, %199 : vector<1x128xf32>
    %c26 = arith.constant 26 : index
    %201 = memref.load %arg1[%c26] : memref<50xf32, #tpu.memory_space<smem>>
    %202 = vector.broadcast %201 : f32 to vector<1x128xf32>
    %203 = arith.mulf %202, %2 : vector<1x128xf32>
    %204 = arith.addf %200, %203 : vector<1x128xf32>
    %c36 = arith.constant 36 : index
    %205 = memref.load %arg1[%c36] : memref<50xf32, #tpu.memory_space<smem>>
    %206 = vector.broadcast %205 : f32 to vector<1x128xf32>
    %207 = arith.mulf %206, %3 : vector<1x128xf32>
    %208 = arith.addf %204, %207 : vector<1x128xf32>
    %c46 = arith.constant 46 : index
    %209 = memref.load %arg1[%c46] : memref<50xf32, #tpu.memory_space<smem>>
    %210 = vector.broadcast %209 : f32 to vector<1x128xf32>
    %211 = arith.mulf %210, %4 : vector<1x128xf32>
    %212 = arith.addf %208, %211 : vector<1x128xf32>
    %cst_37 = arith.constant 0.000000e+00 : f32
    %213 = vector.broadcast %cst_37 : f32 to vector<1x128xf32>
    %214 = arith.maximumf %212, %213 : vector<1x128xf32>
    %c6_38 = arith.constant 6 : index
    %215 = memref.load %arg3[%c6_38] : memref<10xf32, #tpu.memory_space<smem>>
    %216 = vector.broadcast %215 : f32 to vector<1x128xf32>
    %217 = arith.mulf %216, %214 : vector<1x128xf32>
    %218 = arith.addf %188, %217 : vector<1x128xf32>
    %cst_39 = arith.constant 0.000000e+00 : f32
    %219 = vector.broadcast %cst_39 : f32 to vector<1x128xf32>
    %c7 = arith.constant 7 : index
    %220 = memref.load %arg2[%c7] : memref<10xf32, #tpu.memory_space<smem>>
    %221 = vector.broadcast %220 : f32 to vector<1x128xf32>
    %222 = arith.addf %219, %221 : vector<1x128xf32>
    %c7_40 = arith.constant 7 : index
    %223 = memref.load %arg1[%c7_40] : memref<50xf32, #tpu.memory_space<smem>>
    %224 = vector.broadcast %223 : f32 to vector<1x128xf32>
    %225 = arith.mulf %224, %0 : vector<1x128xf32>
    %226 = arith.addf %222, %225 : vector<1x128xf32>
    %c17 = arith.constant 17 : index
    %227 = memref.load %arg1[%c17] : memref<50xf32, #tpu.memory_space<smem>>
    %228 = vector.broadcast %227 : f32 to vector<1x128xf32>
    %229 = arith.mulf %228, %1 : vector<1x128xf32>
    %230 = arith.addf %226, %229 : vector<1x128xf32>
    %c27 = arith.constant 27 : index
    %231 = memref.load %arg1[%c27] : memref<50xf32, #tpu.memory_space<smem>>
    %232 = vector.broadcast %231 : f32 to vector<1x128xf32>
    %233 = arith.mulf %232, %2 : vector<1x128xf32>
    %234 = arith.addf %230, %233 : vector<1x128xf32>
    %c37 = arith.constant 37 : index
    %235 = memref.load %arg1[%c37] : memref<50xf32, #tpu.memory_space<smem>>
    %236 = vector.broadcast %235 : f32 to vector<1x128xf32>
    %237 = arith.mulf %236, %3 : vector<1x128xf32>
    %238 = arith.addf %234, %237 : vector<1x128xf32>
    %c47 = arith.constant 47 : index
    %239 = memref.load %arg1[%c47] : memref<50xf32, #tpu.memory_space<smem>>
    %240 = vector.broadcast %239 : f32 to vector<1x128xf32>
    %241 = arith.mulf %240, %4 : vector<1x128xf32>
    %242 = arith.addf %238, %241 : vector<1x128xf32>
    %cst_41 = arith.constant 0.000000e+00 : f32
    %243 = vector.broadcast %cst_41 : f32 to vector<1x128xf32>
    %244 = arith.maximumf %242, %243 : vector<1x128xf32>
    %c7_42 = arith.constant 7 : index
    %245 = memref.load %arg3[%c7_42] : memref<10xf32, #tpu.memory_space<smem>>
    %246 = vector.broadcast %245 : f32 to vector<1x128xf32>
    %247 = arith.mulf %246, %244 : vector<1x128xf32>
    %248 = arith.addf %218, %247 : vector<1x128xf32>
    %cst_43 = arith.constant 0.000000e+00 : f32
    %249 = vector.broadcast %cst_43 : f32 to vector<1x128xf32>
    %c8 = arith.constant 8 : index
    %250 = memref.load %arg2[%c8] : memref<10xf32, #tpu.memory_space<smem>>
    %251 = vector.broadcast %250 : f32 to vector<1x128xf32>
    %252 = arith.addf %249, %251 : vector<1x128xf32>
    %c8_44 = arith.constant 8 : index
    %253 = memref.load %arg1[%c8_44] : memref<50xf32, #tpu.memory_space<smem>>
    %254 = vector.broadcast %253 : f32 to vector<1x128xf32>
    %255 = arith.mulf %254, %0 : vector<1x128xf32>
    %256 = arith.addf %252, %255 : vector<1x128xf32>
    %c18 = arith.constant 18 : index
    %257 = memref.load %arg1[%c18] : memref<50xf32, #tpu.memory_space<smem>>
    %258 = vector.broadcast %257 : f32 to vector<1x128xf32>
    %259 = arith.mulf %258, %1 : vector<1x128xf32>
    %260 = arith.addf %256, %259 : vector<1x128xf32>
    %c28 = arith.constant 28 : index
    %261 = memref.load %arg1[%c28] : memref<50xf32, #tpu.memory_space<smem>>
    %262 = vector.broadcast %261 : f32 to vector<1x128xf32>
    %263 = arith.mulf %262, %2 : vector<1x128xf32>
    %264 = arith.addf %260, %263 : vector<1x128xf32>
    %c38 = arith.constant 38 : index
    %265 = memref.load %arg1[%c38] : memref<50xf32, #tpu.memory_space<smem>>
    %266 = vector.broadcast %265 : f32 to vector<1x128xf32>
    %267 = arith.mulf %266, %3 : vector<1x128xf32>
    %268 = arith.addf %264, %267 : vector<1x128xf32>
    %c48 = arith.constant 48 : index
    %269 = memref.load %arg1[%c48] : memref<50xf32, #tpu.memory_space<smem>>
    %270 = vector.broadcast %269 : f32 to vector<1x128xf32>
    %271 = arith.mulf %270, %4 : vector<1x128xf32>
    %272 = arith.addf %268, %271 : vector<1x128xf32>
    %cst_45 = arith.constant 0.000000e+00 : f32
    %273 = vector.broadcast %cst_45 : f32 to vector<1x128xf32>
    %274 = arith.maximumf %272, %273 : vector<1x128xf32>
    %c8_46 = arith.constant 8 : index
    %275 = memref.load %arg3[%c8_46] : memref<10xf32, #tpu.memory_space<smem>>
    %276 = vector.broadcast %275 : f32 to vector<1x128xf32>
    %277 = arith.mulf %276, %274 : vector<1x128xf32>
    %278 = arith.addf %248, %277 : vector<1x128xf32>
    %cst_47 = arith.constant 0.000000e+00 : f32
    %279 = vector.broadcast %cst_47 : f32 to vector<1x128xf32>
    %c9 = arith.constant 9 : index
    %280 = memref.load %arg2[%c9] : memref<10xf32, #tpu.memory_space<smem>>
    %281 = vector.broadcast %280 : f32 to vector<1x128xf32>
    %282 = arith.addf %279, %281 : vector<1x128xf32>
    %c9_48 = arith.constant 9 : index
    %283 = memref.load %arg1[%c9_48] : memref<50xf32, #tpu.memory_space<smem>>
    %284 = vector.broadcast %283 : f32 to vector<1x128xf32>
    %285 = arith.mulf %284, %0 : vector<1x128xf32>
    %286 = arith.addf %282, %285 : vector<1x128xf32>
    %c19 = arith.constant 19 : index
    %287 = memref.load %arg1[%c19] : memref<50xf32, #tpu.memory_space<smem>>
    %288 = vector.broadcast %287 : f32 to vector<1x128xf32>
    %289 = arith.mulf %288, %1 : vector<1x128xf32>
    %290 = arith.addf %286, %289 : vector<1x128xf32>
    %c29 = arith.constant 29 : index
    %291 = memref.load %arg1[%c29] : memref<50xf32, #tpu.memory_space<smem>>
    %292 = vector.broadcast %291 : f32 to vector<1x128xf32>
    %293 = arith.mulf %292, %2 : vector<1x128xf32>
    %294 = arith.addf %290, %293 : vector<1x128xf32>
    %c39 = arith.constant 39 : index
    %295 = memref.load %arg1[%c39] : memref<50xf32, #tpu.memory_space<smem>>
    %296 = vector.broadcast %295 : f32 to vector<1x128xf32>
    %297 = arith.mulf %296, %3 : vector<1x128xf32>
    %298 = arith.addf %294, %297 : vector<1x128xf32>
    %c49 = arith.constant 49 : index
    %299 = memref.load %arg1[%c49] : memref<50xf32, #tpu.memory_space<smem>>
    %300 = vector.broadcast %299 : f32 to vector<1x128xf32>
    %301 = arith.mulf %300, %4 : vector<1x128xf32>
    %302 = arith.addf %298, %301 : vector<1x128xf32>
    %cst_49 = arith.constant 0.000000e+00 : f32
    %303 = vector.broadcast %cst_49 : f32 to vector<1x128xf32>
    %304 = arith.maximumf %302, %303 : vector<1x128xf32>
    %c9_50 = arith.constant 9 : index
    %305 = memref.load %arg3[%c9_50] : memref<10xf32, #tpu.memory_space<smem>>
    %306 = vector.broadcast %305 : f32 to vector<1x128xf32>
    %307 = arith.mulf %306, %304 : vector<1x128xf32>
    %308 = arith.addf %278, %307 : vector<1x128xf32>
    %cst_51 = arith.constant 0.000000e+00 : f32
    %309 = vector.broadcast %cst_51 : f32 to vector<1x128xf32>
    %310 = arith.subf %309, %308 : vector<1x128xf32>
    %311 = math.exp %310 : vector<1x128xf32>
    %cst_52 = arith.constant 1.000000e+00 : f32
    %312 = vector.broadcast %cst_52 : f32 to vector<1x128xf32>
    %313 = arith.addf %312, %311 : vector<1x128xf32>
    %314 = tpu.reciprocal %313 {approx = true} : vector<1x128xf32> -> vector<1x128xf32>
    %c0_53 = arith.constant 0 : index
    %c0_54 = arith.constant 0 : index
    %315 = vector.load %arg6[%c0_53, %c0_54] : memref<1x128xf32, #tpu.memory_space<vmem>>, vector<1x128xf32>
    tpu.vector_store %arg6[%c0_53, %c0_54], %314 {strides = array<i32>} : memref<1x128xf32, #tpu.memory_space<vmem>>, vector<1x128xf32>,
    return
  }
  func.func @transform_0(%arg0: i32) -> i32 {
    %c0_i32 = arith.constant 0 : i32
    %c0_i32_0 = arith.constant 0 : i32
    return %c0_i32 : i32
  }
  func.func @transform_1(%arg0: i32) -> i32 {
    %c0_i32 = arith.constant 0 : i32
    %c0_i32_0 = arith.constant 0 : i32
    return %c0_i32 : i32
  }
  func.func @transform_2(%arg0: i32) -> i32 {
    %c0_i32 = arith.constant 0 : i32
    %c0_i32_0 = arith.constant 0 : i32
    return %c0_i32 : i32
  }
  func.func @transform_3(%arg0: i32) -> i32 {
    %c0_i32 = arith.constant 0 : i32
    %c0_i32_0 = arith.constant 0 : i32
    return %c0_i32 : i32
  }
  func.func @transform_4(%arg0: i32) -> (i32, i32) {
    %c0_i32 = arith.constant 0 : i32
    %c0_i32_0 = arith.constant 0 : i32
    return %c0_i32, %arg0 : i32, i32
  }
  func.func @transform_5(%arg0: i32) -> (i32, i32) {
    %c0_i32 = arith.constant 0 : i32
    %c0_i32_0 = arith.constant 0 : i32
    return %c0_i32, %arg0 : i32, i32
  }
}

</mosaic_0001>

<bundles_post_ra>
// kernel: tpu_custom_call.1
= control target key start
LH: loop header
LB: loop body
LE: loop exit
PB: predicated region body
PF: predicated region fallthrough
CT: control target
= control target key end

     0   :  { %11 = vsyncpa [#allocation6], 0  ;;  %s774_s0 = inlined_call_operand.vmem [shape: f32[50], index: 0, kind: input, shape index: {}]   ;;  %s775_s1 = inlined_call_operand.vmem [shape: f32[10], index: 1, kind: input, shape index: {}]   ;;  %s776_s2 = inlined_call_operand.vmem [shape: f32[10], index: 2, kind: input, shape index: {}]   ;;  %s777_s3 = inlined_call_operand.<no memory space> [shape: f32[1], index: 3, kind: input, shape index: {}]   ;;  %s778_s4 = inlined_call_operand.hbm [shape: f32[5,128], index: 4, kind: input, shape index: {}]   ;;  %s779_s5 = inlined_call_operand.hbm [shape: f32[1,128], index: 5, kind: output, shape index: {}]  }
   0x1   :  { %12 = vsyncpa [#allocation8], 0 }
   0x2   :  { %13 = vsyncpa [#allocation4], 0  ;;  %s31_s20 = sshll.u32 %s775_s1, 4  ;;  %s32_s20 = int_to_ptr.vmem [resolvable:$true] %s31_s20 }
   0x3   :  { %14 = vsyncpa [#allocation5], 0  ;;  %s21_s23 = sshll.u32 %s774_s0, 4  ;;  %s457_s24 = scalar_lea.vmem %s32_s20, 16  ;;  %s22_s23 = int_to_ptr.vmem [resolvable:$true] %s21_s23 }
   0x4   :  { %p458_p0 = scmp.ne.s32.totalorder %s32_s20, %s457_s24  ;;  %p462_p1 = scmp.lt.s32.totalorder %s32_s20, %s32_s20 }
   0x5   :  { %p463_p2 = scmp.lt.s32.totalorder %s457_s24, %s457_s24 }
   0x7   :  { %p464_p3 = por %p463_p2, %p462_p1 }
   0x9   :  { %p465_p4 = pnand %p464_p3, %p458_p0 }
   0xb   :  { %468 = shalt.err (!%p465_p4)
}
   0xc   :  { %s541_s25 = smov [#allocation7]   ;;  %s469_s26 = scalar_lea.vmem %s22_s23, 16 }
   0xd   :  { %34 = dma.vmem_to_smem %s32_s20, 16, %s541_s25, [#allocation8]  }
   0xe   :  { %p470_p5 = scmp.ne.s32.totalorder %s22_s23, %s469_s26  ;;  %p474_p6 = scmp.lt.s32.totalorder %s22_s23, %s22_s23 }
   0xf   :  { %p475_p7 = scmp.lt.s32.totalorder %s469_s26, %s469_s26 }
  0x11   :  { %p476_p8 = por %p475_p7, %p474_p6 }
  0x13   :  { %p477_p9 = pnand %p476_p8, %p470_p5 }
  0x15   :  { %480 = shalt.err (!%p477_p9)
}
  0x16   :  { %s542_s1 = smov [#allocation3]   ;;  %s41_s28 = sshll.u32 %s776_s2, 4  ;;  %s42_s28 = int_to_ptr.vmem [resolvable:$true] %s41_s28 }
  0x17   :  { %24 = dma.vmem_to_smem %s22_s23, 16, %s542_s1, [#allocation6]  }
  0x18   :  { %s481_s29 = scalar_lea.vmem %s42_s28, 16  ;;  %p486_p11 = scmp.lt.s32.totalorder %s42_s28, %s42_s28 }
  0x19   :  { %p482_p10 = scmp.ne.s32.totalorder %s42_s28, %s481_s29  ;;  %p487_p12 = scmp.lt.s32.totalorder %s481_s29, %s481_s29 }
  0x1b   :  { %p488_p13 = por %p487_p12, %p486_p11 }
  0x1d   :  { %p489_p0 = pnand %p488_p13, %p482_p10 }
  0x1f   :  { %492 = shalt.err (!%p489_p0)
}
  0x20   :  { %s543_s30 = smov [#allocation9]   ;;  %s544_s6 = smov [#allocation10]  }
  0x21   :  { %44 = dma.vmem_to_smem %s42_s28, 16, %s543_s30, [#allocation8]  }
  0x22   :  { %s53_s7 = sshll.u32 %s544_s6, 4  ;;  %s54_s7 = int_to_ptr.vmem [resolvable:$true] %s53_s7 }
  0x23   :  { %s501_s8 = scalar_lea.vmem %s54_s7, 128  ;;  %p506_p2 = scmp.lt.s32.totalorder %s54_s7, %s54_s7 }
  0x24   :  { %p502_p1 = scmp.ne.s32.totalorder %s54_s7, %s501_s8  ;;  %p507_p3 = scmp.lt.s32.totalorder %s501_s8, %s501_s8 }
  0x26   :  { %p508_p4 = por %p507_p3, %p506_p2 }
  0x28   :  { %p509_p5 = pnand %p508_p4, %p502_p1 }
  0x2a   :  { %512 = shalt.err (!%p509_p5)
}
  0x2b   :  { %56 = dma.hbm_to_vmem [thread:$0]  %s778_s4, 128, %s54_s7, [#allocation4]  }
  0x2c   :  { %533 = dma.done.wait [#allocation6], 16  }
  0x2d   :  { %534 = vsyncadd [#allocation6], 4294967280 }
  0x2e   :  { %535 = dma.done.wait [#allocation8], 32  }
  0x2f   :  { %536 = vsyncadd [#allocation8], 4294967264 }
  0x30   :  { %537 = dma.done.wait [#allocation4], 128  }
  0x31   :  { %538 = vsyncadd [#allocation4], 4294967168 }
  0x32   :  { %69 = sfence }
  0x33   :  { %s78_s10 = sld [smem:[#allocation7]]  ;;  %v592_v0 = vld [vmem:[#allocation10] sm:$0x1]  ;;  %v597_v3 = vld [vmem:[#allocation10 + $0x1] sm:$0x1] }
  0x34   :  { %s81_s11 = sld [smem:[#allocation3]]  ;;  %v608_v8 = vld [vmem:[#allocation10 + $0x2] sm:$0x1]  ;;  %v618_v16 = vld [vmem:[#allocation10 + $0x3] sm:$0x1] }
  0x35   :  { %s381_s12 = sld [smem:[#allocation3 + $0xa]]  ;;  %v632_v24 = vld [vmem:[#allocation10 + $0x4] sm:$0x1] }
  0x36   :  { %s382_s13 = sld [smem:[#allocation3 + $0x14]] }
  0x37   :  { %s588_s14 = sld [smem:[#allocation3 + $0x1e]] }
  0x38   :  { %s590_s15 = sld [smem:[#allocation3 + $0x28]] }
  0x39   :  { %s594_s16 = sld [smem:[#allocation9]]  ;;  %v79_v4 = vstv %s78_s10 }
  0x3a   :  { %v82_v1 = vstv %s81_s11  ;;  %s385_s4 = sld [smem:[#allocation7 + $0x1]] }
  0x3b   :  { %s386_s17 = sld [smem:[#allocation3 + $0x1]]  ;;  %v83_v2 = vmul.f32 %v82_v1, %v592_v0  ;;  %v86_v5 = vstv %s381_s12 }
  0x3c   :  { %s387_s18 = sld [smem:[#allocation3 + $0xb]]  ;;  %v87_v7 = vmul.f32 %v86_v5, %v597_v3  ;;  %v90_v9 = vstv %s382_s13 }
  0x3d   :  { %s599_s19 = sld [smem:[#allocation3 + $0x15]]  ;;  %v84_v6 = vadd.f32 %v83_v2, %v79_v4  ;;  %v91_v15 = vmul.f32 %v90_v9, %v608_v8  ;;  %v94_v17 = vstv %s588_s14  ;;  %v76_v4 = vstv %s777_s3 }
  0x3e   :  { %s601_s20 = sld [smem:[#allocation3 + $0x1f]]  ;;  %v95_v22 = vmul.f32 %v94_v17, %v618_v16  ;;  %v98_v25 = vstv %s590_s15 }
  0x3f   :  { %s603_s21 = sld [smem:[#allocation3 + $0x29]]  ;;  %v88_v14 = vadd.f32 %v87_v7, %v84_v6  ;;  %v99_v33 = vmul.f32 %v98_v25, %v632_v24  ;;  %v103_v54 = vstv %s594_s16 }
  0x40   :  { %s606_s22 = sld [smem:[#allocation9 + $0x1]]  ;;  %v107_v11 = vstv %s385_s4 }
  0x41   :  { %v110_v10 = vstv %s386_s17  ;;  %s610_s23 = sld [smem:[#allocation7 + $0x2]]  ;;  %v92_v21 = vadd.f32 %v91_v15, %v88_v14 }
  0x42   :  { %v111_v12 = vmul.f32 %v110_v10, %v592_v0  ;;  %v114_v13 = vstv %s387_s18  ;;  %s393_s24 = sld [smem:[#allocation3 + $0x2]] }
  0x43   :  { %s613_s25 = sld [smem:[#allocation3 + $0xc]]  ;;  %v115_v19 = vmul.f32 %v114_v13, %v597_v3  ;;  %v118_v20 = vstv %s599_s19  ;;  %v96_v32 = vadd.f32 %v95_v22, %v92_v21 }
  0x44   :  { %s616_s26 = sld [smem:[#allocation3 + $0x16]]  ;;  %v112_v18 = vadd.f32 %v111_v12, %v107_v11  ;;  %v119_v27 = vmul.f32 %v118_v20, %v608_v8  ;;  %v122_v29 = vstv %s601_s20 }
  0x45   :  { %s622_s1 = sld [smem:[#allocation3 + $0x20]]  ;;  %v123_v35 = vmul.f32 %v122_v29, %v618_v16  ;;  %v126_v38 = vstv %s603_s21  ;;  %v100_v42 = vadd.f32 %v99_v33, %v96_v32 }
  0x46   :  { %s625_s0 = sld [smem:[#allocation3 + $0x2a]]  ;;  %v116_v26 = vadd.f32 %v115_v19, %v112_v18  ;;  %v127_v46 = vmul.f32 %v126_v38, %v632_v24  ;;  %v131_v13 = vstv %s606_s22 }
  0x47   :  { %s627_s27 = sld [smem:[#allocation9 + $0x2]]  ;;  %v135_v30 = vstv %s610_s23  ;;  %v101_v53 = vmax.f32 %v100_v42, 0.0 }
  0x48   :  { %v138_v23 = vstv %s393_s24  ;;  %s630_s28 = sld [smem:[#allocation7 + $0x3]]  ;;  %v120_v34 = vadd.f32 %v119_v27, %v116_v26 }
  0x49   :  { %v139_v28 = vmul.f32 %v138_v23, %v592_v0  ;;  %s400_s29 = sld [smem:[#allocation3 + $0x3]]  ;;  %v142_v31 = vstv %s613_s25  ;;  %v104_v5 = vmul.f32 %v103_v54, %v101_v53 }
  0x4a   :  { %s401_s30 = sld [smem:[#allocation3 + $0xd]]  ;;  %v143_v37 = vmul.f32 %v142_v31, %v597_v3  ;;  %v146_v39 = vstv %s616_s26  ;;  %v124_v45 = vadd.f32 %v123_v35, %v120_v34 }
  0x4b   :  { %s640_s6 = sld [smem:[#allocation3 + $0x17]]  ;;  %v140_v36 = vadd.f32 %v139_v28, %v135_v30  ;;  %v147_v48 = vmul.f32 %v146_v39, %v608_v8  ;;  %v150_v49 = vstv %s622_s1  ;;  %v105_v20 = vadd.f32 %v104_v5, %v76_v4 }
  0x4c   :  { %s643_s7 = sld [smem:[#allocation3 + $0x21]]  ;;  %v128_v55 = vadd.f32 %v127_v46, %v124_v45  ;;  %v151_v57 = vmul.f32 %v150_v49, %v618_v16  ;;  %v154_v58 = vstv %s625_s0 }
  0x4d   :  { %s647_s8 = sld [smem:[#allocation3 + $0x2b]]  ;;  %v144_v47 = vadd.f32 %v143_v37, %v140_v36  ;;  %v155_v11 = vmul.f32 %v154_v58, %v632_v24 }
  0x4e   :  { %s651_s2 = sld [smem:[#allocation9 + $0x3]]  ;;  %v163_v40 = vstv %s630_s28  ;;  %v129_v9 = vmax.f32 %v128_v55, 0.0 }
  0x4f   :  { %v166_v41 = vstv %s400_s29  ;;  %s654_s9 = sld [smem:[#allocation7 + $0x4]]  ;;  %v148_v56 = vadd.f32 %v147_v48, %v144_v47 }
  0x50   :  { %v167_v43 = vmul.f32 %v166_v41, %v592_v0  ;;  %v170_v44 = vstv %s401_s30  ;;  %s407_s10 = sld [smem:[#allocation3 + $0x4]]  ;;  %v132_v22 = vmul.f32 %v131_v13, %v129_v9 }
  0x51   :  { %s408_s11 = sld [smem:[#allocation3 + $0xe]]  ;;  %v171_v51 = vmul.f32 %v170_v44, %v597_v3  ;;  %v174_v52 = vstv %s640_s6  ;;  %v152_v10 = vadd.f32 %v151_v57, %v148_v56 }
  0x52   :  { %v168_v50 = vadd.f32 %v167_v43, %v163_v40  ;;  %s661_s12 = sld [smem:[#allocation3 + $0x18]]  ;;  %v175_v60 = vmul.f32 %v174_v52, %v608_v8  ;;  %v178_v63 = vstv %s643_s7  ;;  %v133_v42 = vadd.f32 %v132_v22, %v105_v20 }
  0x53   :  { %s664_s13 = sld [smem:[#allocation3 + $0x22]]  ;;  %v179_v15 = vmul.f32 %v178_v63, %v618_v16  ;;  %v182_v17 = vstv %s647_s8  ;;  %v156_v23 = vadd.f32 %v155_v11, %v152_v10  ;;  %v159_v43 = vstv %s627_s27 }
  0x54   :  { %s667_s14 = sld [smem:[#allocation3 + $0x2c]]  ;;  %v172_v59 = vadd.f32 %v171_v51, %v168_v50  ;;  %v183_v28 = vmul.f32 %v182_v17, %v632_v24  ;;  %v187_v50 = vstv %s651_s2 }
  0x55   :  { %s671_s15 = sld [smem:[#allocation9 + $0x4]]  ;;  %v191_v61 = vstv %s654_s9  ;;  %v157_v39 = vmax.f32 %v156_v23, 0.0 }
  0x56   :  { %v194_v62 = vstv %s407_s10  ;;  %s675_s4 = sld [smem:[#allocation7 + $0x5]]  ;;  %v176_v14 = vadd.f32 %v175_v60, %v172_v59 }
  0x57   :  { %v195_v1 = vmul.f32 %v194_v62, %v592_v0  ;;  %v198_v2 = vstv %s408_s11  ;;  %s414_s16 = sld [smem:[#allocation3 + $0x5]]  ;;  %v160_v54 = vmul.f32 %v159_v43, %v157_v39 }
  0x58   :  { %v199_v6 = vmul.f32 %v198_v2, %v597_v3  ;;  %v202_v7 = vstv %s661_s12  ;;  %s415_s19 = sld [smem:[#allocation3 + $0xf]]  ;;  %v180_v27 = vadd.f32 %v179_v15, %v176_v14 }
  0x59   :  { %v196_v12 = vadd.f32 %v195_v1, %v191_v61  ;;  %s416_s20 = sld [smem:[#allocation3 + $0x19]]  ;;  %v203_v19 = vmul.f32 %v202_v7, %v608_v8  ;;  %v206_v21 = vstv %s664_s13  ;;  %v161_v4 = vadd.f32 %v160_v54, %v133_v42 }
  0x5a   :  { %s687_s21 = sld [smem:[#allocation3 + $0x23]]  ;;  %v207_v32 = vmul.f32 %v206_v21, %v618_v16  ;;  %v210_v35 = vstv %s667_s14  ;;  %v184_v40 = vadd.f32 %v183_v28, %v180_v27 }
  0x5b   :  { %v200_v18 = vadd.f32 %v199_v6, %v196_v12  ;;  %s691_s3 = sld [smem:[#allocation3 + $0x2d]]  ;;  %v211_v45 = vmul.f32 %v210_v35, %v632_v24  ;;  %v215_v12 = vstv %s671_s15 }
  0x5c   :  { %s694_s23 = sld [smem:[#allocation9 + $0x5]]  ;;  %v219_v25 = vstv %s675_s4  ;;  %v185_v55 = vmax.f32 %v184_v40, 0.0 }
  0x5d   :  { %v222_v26 = vstv %s414_s16  ;;  %s697_s22 = sld [smem:[#allocation7 + $0x6]]  ;;  %v204_v31 = vadd.f32 %v203_v19, %v200_v18 }
  0x5e   :  { %v223_v29 = vmul.f32 %v222_v26, %v592_v0  ;;  %v226_v30 = vstv %s415_s19  ;;  %s421_s24 = sld [smem:[#allocation3 + $0x6]]  ;;  %v188_v5 = vmul.f32 %v187_v50, %v185_v55 }
  0x5f   :  { %v227_v33 = vmul.f32 %v226_v30, %v597_v3  ;;  %v230_v34 = vstv %s416_s20  ;;  %s422_s25 = sld [smem:[#allocation3 + $0x10]]  ;;  %v208_v44 = vadd.f32 %v207_v32, %v204_v31 }
  0x60   :  { %v224_v36 = vadd.f32 %v223_v29, %v219_v25  ;;  %v231_v37 = vmul.f32 %v230_v34, %v608_v8  ;;  %s423_s26 = sld [smem:[#allocation3 + $0x1a]]  ;;  %v234_v38 = vstv %s687_s21  ;;  %v189_v25 = vadd.f32 %v188_v5, %v161_v4 }
  0x61   :  { %s706_s1 = sld [smem:[#allocation3 + $0x24]]  ;;  %v235_v47 = vmul.f32 %v234_v38, %v618_v16  ;;  %v238_v51 = vstv %s691_s3  ;;  %v212_v58 = vadd.f32 %v211_v45, %v208_v44  ;;  %s545_s3 = smov [#allocation11]  }
  0x62   :  { %v228_v41 = vadd.f32 %v227_v33, %v224_v36  ;;  %s708_s0 = sld [smem:[#allocation3 + $0x2e]]  ;;  %v239_v63 = vmul.f32 %v238_v51, %v632_v24  ;;  %v243_v31 = vstv %s694_s23  ;;  %s370_s23 = sshll.u32 %s545_s3, 4  ;;  %s371_s23 = int_to_ptr.vmem [resolvable:$true] %s370_s23 }
  0x63   :  { %s712_s28 = sld [smem:[#allocation9 + $0x6]]  ;;  %v247_v48 = vstv %s697_s22  ;;  %v213_v7 = vmax.f32 %v212_v58, 0.0  ;;  %s513_s22 = scalar_lea.vmem %s371_s23, 16 }
  0x64   :  { %v232_v46 = vadd.f32 %v231_v37, %v228_v41  ;;  %v250_v49 = vstv %s421_s24  ;;  %s716_s29 = sld [smem:[#allocation7 + $0x7]]  ;;  %p514_p6 = scmp.ne.s32.totalorder %s371_s23, %s513_s22 }
  0x65   :  { %v251_v52 = vmul.f32 %v250_v49, %v592_v0  ;;  %v254_v53 = vstv %s422_s25  ;;  %s428_s30 = sld [smem:[#allocation3 + $0x7]]  ;;  %v216_v26 = vmul.f32 %v215_v12, %v213_v7  ;;  %s517_s24 = scalar_lea.vmem %s371_s23, 32 }
  0x66   :  { %v255_v56 = vmul.f32 %v254_v53, %v597_v3  ;;  %v258_v57 = vstv %s423_s26  ;;  %s429_s27 = sld [smem:[#allocation3 + $0x11]]  ;;  %v236_v62 = vadd.f32 %v235_v47, %v232_v46  ;;  %p518_p7 = scmp.lt.s32.totalorder %s371_s23, %s371_s23 }
  0x67   :  { %v252_v59 = vadd.f32 %v251_v52, %v247_v48  ;;  %v259_v60 = vmul.f32 %v258_v57, %v608_v8  ;;  %v262_v61 = vstv %s706_s1  ;;  %s430_s6 = sld [smem:[#allocation3 + $0x1b]]  ;;  %v217_v37 = vadd.f32 %v216_v26, %v189_v25  ;;  %p519_p8 = scmp.lt.s32.totalorder %s517_s24, %s513_s22 }
  0x68   :  { %s725_s7 = sld [smem:[#allocation3 + $0x25]]  ;;  %v263_v2 = vmul.f32 %v262_v61, %v618_v16  ;;  %v266_v6 = vstv %s708_s0  ;;  %v240_v13 = vadd.f32 %v239_v63, %v236_v62 }
  0x69   :  { %v256_v1 = vadd.f32 %v255_v56, %v252_v59  ;;  %s728_s8 = sld [smem:[#allocation3 + $0x2f]]  ;;  %v267_v18 = vmul.f32 %v266_v6, %v632_v24  ;;  %v271_v50 = vstv %s712_s28  ;;  %p520_p9 = por %p519_p8, %p518_p7 }
  0x6a   :  { %s731_s2 = sld [smem:[#allocation9 + $0x7]]  ;;  %v275_v10 = vstv %s716_s29  ;;  %v241_v28 = vmax.f32 %v240_v13, 0.0 }
  0x6b   :  { %v260_v9 = vadd.f32 %v259_v60, %v256_v1  ;;  %v278_v11 = vstv %s428_s30  ;;  %s734_s9 = sld [smem:[#allocation7 + $0x8]]  ;;  %p521_p10 = pnand %p520_p9, %p514_p6 }
  0x6c   :  { %v279_v14 = vmul.f32 %v278_v11, %v592_v0  ;;  %v282_v15 = vstv %s429_s27  ;;  %s435_s10 = sld [smem:[#allocation3 + $0x8]]  ;;  %v244_v40 = vmul.f32 %v243_v31, %v241_v28 }
  0x6d   :  { %v264_v17 = vadd.f32 %v263_v2, %v260_v9  ;;  %v283_v19 = vmul.f32 %v282_v15, %v597_v3  ;;  %v286_v20 = vstv %s430_s6  ;;  %s436_s11 = sld [smem:[#allocation3 + $0x12]] }
  0x6e   :  { %v280_v21 = vadd.f32 %v279_v14, %v275_v10  ;;  %v287_v22 = vmul.f32 %v286_v20, %v608_v8  ;;  %v290_v23 = vstv %s725_s7  ;;  %s437_s12 = sld [smem:[#allocation3 + $0x1c]]  ;;  %v245_v53 = vadd.f32 %v244_v40, %v217_v37 }
  0x6f   :  { %v294_v27 = vstv %s728_s8  ;;  %s743_s13 = sld [smem:[#allocation3 + $0x26]]  ;;  %v291_v30 = vmul.f32 %v290_v23, %v618_v16  ;;  %v268_v32 = vadd.f32 %v267_v18, %v264_v17 }
  0x70   :  { %v284_v29 = vadd.f32 %v283_v19, %v280_v21  ;;  %s746_s14 = sld [smem:[#allocation3 + $0x30]]  ;;  %v295_v34 = vmul.f32 %v294_v27, %v632_v24  ;;  %v299_v62 = vstv %s731_s2 }
  0x71   :  { %s749_s15 = sld [smem:[#allocation9 + $0x8]]  ;;  %v303_v35 = vstv %s734_s9  ;;  %v269_v47 = vmax.f32 %v268_v32, 0.0 }
  0x72   :  { %v288_v33 = vadd.f32 %v287_v22, %v284_v29  ;;  %v306_v36 = vstv %s435_s10  ;;  %s753_s4 = sld [smem:[#allocation7 + $0x9]] }
  0x73   :  { %v307_v38 = vmul.f32 %v306_v36, %v592_v0  ;;  %v310_v39 = vstv %s436_s11  ;;  %s442_s16 = sld [smem:[#allocation3 + $0x9]]  ;;  %v272_v58 = vmul.f32 %v271_v50, %v269_v47 }
  0x74   :  { %v292_v41 = vadd.f32 %v291_v30, %v288_v33  ;;  %v311_v42 = vmul.f32 %v310_v39, %v597_v3  ;;  %v314_v43 = vstv %s437_s12  ;;  %s443_s17 = sld [smem:[#allocation3 + $0x13]] }
  0x75   :  { %v308_v44 = vadd.f32 %v307_v38, %v303_v35  ;;  %v315_v45 = vmul.f32 %v314_v43, %v608_v8  ;;  %v318_v46 = vstv %s743_s13  ;;  %s444_s18 = sld [smem:[#allocation3 + $0x1d]]  ;;  %v273_v10 = vadd.f32 %v272_v58, %v245_v53 }
  0x76   :  { %v296_v48 = vadd.f32 %v295_v34, %v292_v41  ;;  %v322_v49 = vstv %s746_s14  ;;  %s445_s19 = sld [smem:[#allocation3 + $0x27]]  ;;  %v319_v52 = vmul.f32 %v318_v46, %v618_v16 }
  0x77   :  { %v312_v51 = vadd.f32 %v311_v42, %v308_v44  ;;  %s446_s20 = sld [smem:[#allocation3 + $0x31]]  ;;  %v323_v55 = vmul.f32 %v322_v49, %v632_v24  ;;  %v327_v14 = vstv %s749_s15 }
  0x78   :  { %v331_v56 = vstv %s753_s4  ;;  %v297_v59 = vmax.f32 %v296_v48, 0.0  ;;  %s447_s21 = sld [smem:[#allocation9 + $0x9]] }
  0x79   :  { %v316_v54 = vadd.f32 %v315_v45, %v312_v51  ;;  %v334_v57 = vstv %s442_s16 }
  0x7a   :  { %v335_v60 = vmul.f32 %v334_v57, %v592_v0  ;;  %v338_v61 = vstv %s443_s17  ;;  %v300_v11 = vmul.f32 %v299_v62, %v297_v59 }
  0x7b   :  { %v320_v63 = vadd.f32 %v319_v52, %v316_v54  ;;  %v339_v1 = vmul.f32 %v338_v61, %v597_v3  ;;  %v342_v2 = vstv %s444_s18 }
  0x7c   :  { %v336_v4 = vadd.f32 %v335_v60, %v331_v56  ;;  %v343_v5 = vmul.f32 %v342_v2, %v608_v8  ;;  %v346_v6 = vstv %s445_s19  ;;  %v301_v18 = vadd.f32 %v300_v11, %v273_v10 }
  0x7d   :  { %v324_v7 = vadd.f32 %v323_v55, %v320_v63  ;;  %v350_v9 = vstv %s446_s20  ;;  %v347_v13 = vmul.f32 %v346_v6, %v618_v16 }
  0x7e   :  { %v340_v12 = vadd.f32 %v339_v1, %v336_v4  ;;  %v351_v17 = vmul.f32 %v350_v9, %v632_v24  ;;  %v355_v21 = vstv %s447_s21 }
  0x7f   :  { %v325_v0 = vmax.f32 %v324_v7, 0.0 }
  0x80   :  { %v344_v15 = vadd.f32 %v343_v5, %v340_v12 }
  0x81   :  { %v328_v3 = vmul.f32 %v327_v14, %v325_v0 }
  0x82   :  { %v348_v19 = vadd.f32 %v347_v13, %v344_v15 }
  0x83   :  { %v329_v8 = vadd.f32 %v328_v3, %v301_v18 }
  0x84   :  { %v352_v20 = vadd.f32 %v351_v17, %v348_v19 }
  0x86   :  { %v353_v22 = vmax.f32 %v352_v20, 0.0 }
  0x88   :  { %v356_v23 = vmul.f32 %v355_v21, %v353_v22 }
  0x8a   :  { %v357_v25 = vadd.f32 %v356_v23, %v329_v8 }
  0x8c   :  { %v358_v26 = vsub.f32 0.0, %v357_v25 }
  0x8e   :  { %v359_v27 = vmul.f32 1.442695, %v358_v26 }
  0x90   :  { %453 = vpow2.f32 %v359_v27 }
  0x9d   :  { %v454_v28 = vpop.eup %453 }
  0x9e   :  { %v361_v29 = vadd.f32 1.0, %v454_v28 }
  0xa0   :  { %455 = vrcp.f32 %v361_v29 }
  0xad   :  { %v456_v16 = vpop.eup %455 }
  0xae   :  { %363 = vst [vmem:[#allocation11] sm:$0x1] %v456_v16 }
  0xaf   :  { %524 = shalt.err (!%p521_p10)
}
  0xb0   :  { %373 = dma.vmem_to_hbm [thread:$0]  %s371_s23, 16, %s779_s5, [#allocation5]  }
  0xb1   :  { %539 = dma.done.wait [#allocation5], 16  }
  0xb2   :  { %540 = vsyncadd [#allocation5], 4294967280 }
  0xb3   :  { %377 = vsyncpa [#allocation4], 1 }
  0xb4   :  { %378 = vsyncpa [#allocation5], 1 }
  0xb5   :  { %379 = vsyncpa [#allocation6], 1 }
  0xb6   :  { %380 = vsyncpa [#allocation8], 1 }

</bundles_post_ra>
